<compile_context>
chip_gen: v7x
topology: tpu7x:2x2x1
jax: 0.10.0
libtpu: 0.0.40
codegen_flags: <defaults>
</compile_context>

<pallas_src>
import functools
import math

import jax
import jax.numpy as jnp
from jax.experimental import pallas as pl
from jax.experimental.pallas import tpu as pltpu


def mlp_kernel(xt_ref, w1_ref, b1_ref, w2_ref, b2_ref, w3_ref, b3_ref, o_ref,
               *, compute_dtype):
    # Batch sits on the lane axis: xt tile is (in_features, TM).
    xb = xt_ref[...].astype(compute_dtype)

    # Hidden layer 1: (H, in) @ (in, TM) -> (H, TM); bias-add + ReLU in f32 (VPU).
    h = jnp.dot(w1_ref[...].astype(compute_dtype), xb,
                preferred_element_type=jnp.float32)
    h = jnp.maximum(h + b1_ref[...], 0.0)          # (H,1) broadcast over lanes

    # Hidden layer 2: (H, H) @ (H, TM) -> (H, TM).
    h = jnp.dot(w2_ref[...].astype(compute_dtype), h.astype(compute_dtype),
                preferred_element_type=jnp.float32)
    h = jnp.maximum(h + b2_ref[...], 0.0)

    # Output layer: (1, H) @ (H, TM) -> (1, TM); lane-dense output store.
    out = jnp.dot(w3_ref[...].astype(compute_dtype), h.astype(compute_dtype),
                  preferred_element_type=jnp.float32)
    o_ref[...] = (out + b3_ref[0, 0]).astype(o_ref.dtype)
    # Dropout with p=0.0 is the identity, so it is omitted.
    # TODO(synk): dropout with p > 0 would need pltpu.prng_seed + prng_random_bits masking.


def mlp_forward(x, params, *, tile_batch=1024, compute_dtype=jnp.float32):
    """x: (B, input_size) float32. params: (w1,b1,w2,b2,w3,b3) with w in (out, in),
    b in (out, 1) layout. Returns (B, output_size) float32."""
    w1, b1, w2, b2, w3, b3 = params
    B, in_size = x.shape
    h1, h2, out_size = w1.shape[0], w2.shape[0], w3.shape[0]
    assert out_size == 1, "SMEM scalar-bias path assumes output_size == 1"

    # Batch on the lane axis.
    xt = x.T                                    # (in_size, B)

    if B <= tile_batch:
        tm, Bp = B, B                           # single tile: block == full extent
    else:
        tm = tile_batch                         # multiple of 128 -> lane aligned
        Bp = pl.cdiv(B, tm) * tm
        if Bp != B:
            xt = jnp.pad(xt, ((0, 0), (0, Bp - B)))

    grid = (Bp // tm,)

    # Weights / biases: constant block index -> fetched once, stay VMEM-resident.
    const = lambda shape: pl.BlockSpec(shape, lambda i: (0, 0))

    cost = pl.CostEstimate(
        flops=2 * B * (in_size * h1 + h1 * h2 + h2 * out_size),
        transcendentals=0,
        bytes_accessed=(x.size + B * out_size) * 4 + sum(int(p.size) for p in params) * 4,
    )

    out_t = pl.pallas_call(
        functools.partial(mlp_kernel, compute_dtype=compute_dtype),
        out_shape=jax.ShapeDtypeStruct((out_size, Bp), jnp.float32),
        grid=grid,
        in_specs=[
            pl.BlockSpec((in_size, tm), lambda i: (0, i)),       # x tile (batch on lanes)
            const(w1.shape), const(b1.shape),
            const(w2.shape), const(b2.shape),
            const(w3.shape),
            pl.BlockSpec(memory_space=pltpu.MemorySpace.SMEM),   # scalar output bias
        ],
        out_specs=pl.BlockSpec((out_size, tm), lambda i: (0, i)),
        compiler_params=pltpu.CompilerParams(
            dimension_semantics=("parallel",)),                  # shard tiles across TCs (v7x)
        cost_estimate=cost,
    )(xt, w1, b1, w2, b2, w3, b3)

    return out_t[:, :B].T                       # back to (B, output_size)


def xavier_uniform(key, fan_in, fan_out):
    # Matches torch.nn.init.xavier_uniform_ (gain=1) on an (out, in) weight.
    a = math.sqrt(6.0 / (fan_in + fan_out))
    return jax.random.uniform(key, (fan_out, fan_in), jnp.float32, minval=-a, maxval=a)


def init_params(key, input_size=32, hidden_size=32, n_layers=3, output_size=1):
    sizes = [input_size] + [hidden_size] * (n_layers - 1) + [output_size]
    params = []
    for i in range(n_layers):
        key, sub = jax.random.split(key)
        w = xavier_uniform(sub, sizes[i], sizes[i + 1])       # (out, in), torch convention
        b = jnp.zeros((sizes[i + 1], 1), jnp.float32)         # constant_(bias, 0)
        params.extend([w, b])
    return tuple(params)


def reference_forward(x, params):
    w1, b1, w2, b2, w3, b3 = params
    h = jnp.maximum(x @ w1.T + b1.T, 0.0)
    h = jnp.maximum(h @ w2.T + b2.T, 0.0)
    return h @ w3.T + b3.T


if __name__ == "__main__":
    key = jax.random.PRNGKey(0)
    k_x, k_p, k_big = jax.random.split(key, 3)

    batch, input_size, hidden_size, output_size = 8, 32, 32, 1
    params = init_params(k_p, input_size, hidden_size, n_layers=3,
                         output_size=output_size)

    # --- small batch (single tile) ---
    x = jax.random.normal(k_x, (batch, input_size), jnp.float32)
    out = jax.block_until_ready(mlp_forward(x, params))
    ref = reference_forward(x, params)
    assert out.shape == (batch, output_size)
    assert jnp.allclose(out, ref, atol=1e-5, rtol=1e-5), "small-batch mismatch"

    # --- large batch: exercises multi-step parallel grid + padding ---
    big_batch = 2500
    x_big = jax.random.normal(k_big, (big_batch, input_size), jnp.float32)
    out_big = jax.block_until_ready(mlp_forward(x_big, params, tile_batch=1024))
    ref_big = reference_forward(x_big, params)
    assert out_big.shape == (big_batch, output_size)
    assert jnp.allclose(out_big, ref_big, atol=1e-4, rtol=1e-4), "tiled-batch mismatch"

    # --- bf16 operand path (v6e/v7x memory-bound regime); f32 epilogue kept ---
    out_bf16 = jax.block_until_ready(
        mlp_forward(x_big, params, tile_batch=1024, compute_dtype=jnp.bfloat16))
    assert out_bf16.shape == (big_batch, output_size)
    assert bool(jnp.all(jnp.isfinite(out_bf16)))
    assert jnp.allclose(out_bf16, ref_big, atol=1e-1, rtol=1e-1), "bf16 path mismatch"

    print("KERNEL_OK")
</pallas_src>

<mosaic_0001>
module attributes {stable_mosaic.version = 11 : i64} {
  func.func @mlp_kernel(%arg0: i32, %arg1: memref<32x8xf32, #tpu.memory_space<vmem>>, %arg2: memref<32x32xf32, #tpu.memory_space<vmem>>, %arg3: memref<32x1xf32, #tpu.memory_space<vmem>>, %arg4: memref<32x32xf32, #tpu.memory_space<vmem>>, %arg5: memref<32x1xf32, #tpu.memory_space<vmem>>, %arg6: memref<1x32xf32, #tpu.memory_space<vmem>>, %arg7: memref<1x1xf32, #tpu.memory_space<smem>>, %arg8: memref<1x8xf32, #tpu.memory_space<vmem>>) attributes {dimension_semantics = [#tpu.dimension_semantics<parallel>], iteration_bounds = array<i64: 1>, scalar_prefetch = 0 : i64, scratch_operands = 0 : i64, tpu.core_type = #tpu.core_type<tc>, window_params = [{transform_indices = @transform_0, window_bounds = array<i64: 32, 8>}, {pipeline_mode = #tpu.pipeline_mode<synchronous>, transform_indices = @transform_1, window_bounds = array<i64: 32, 32>}, {pipeline_mode = #tpu.pipeline_mode<synchronous>, transform_indices = @transform_2, window_bounds = array<i64: 32, 1>}, {pipeline_mode = #tpu.pipeline_mode<synchronous>, transform_indices = @transform_3, window_bounds = array<i64: 32, 32>}, {pipeline_mode = #tpu.pipeline_mode<synchronous>, transform_indices = @transform_4, window_bounds = array<i64: 32, 1>}, {pipeline_mode = #tpu.pipeline_mode<synchronous>, transform_indices = @transform_5, window_bounds = array<i64: 1, 32>}, {transform_indices = @transform_6, window_bounds = array<i64: 1, 1>}, {transform_indices = @transform_7, window_bounds = array<i64: 1, 8>}]} {
    %c0 = arith.constant 0 : index
    %c0_0 = arith.constant 0 : index
    %0 = vector.load %arg1[%c0, %c0_0] : memref<32x8xf32, #tpu.memory_space<vmem>>, vector<32x8xf32>
    %c0_1 = arith.constant 0 : index
    %c0_2 = arith.constant 0 : index
    %1 = vector.load %arg2[%c0_1, %c0_2] : memref<32x32xf32, #tpu.memory_space<vmem>>, vector<32x32xf32>
    %cst = arith.constant dense<0.000000e+00> : vector<32x8xf32>
    %2 = tpu.matmul %1, %0, %cst {dimension_numbers = #tpu.dot_dimension_numbers<[1], [0], [0], [1], [0, 0, 1, 1], [], []>} : vector<32x32xf32>, vector<32x8xf32>, vector<32x8xf32> -> vector<32x8xf32>
    %c0_3 = arith.constant 0 : index
    %c0_4 = arith.constant 0 : index
    %3 = vector.load %arg3[%c0_3, %c0_4] : memref<32x1xf32, #tpu.memory_space<vmem>>, vector<32x1xf32>
    %4 = vector.broadcast %3 : vector<32x1xf32> to vector<32x8xf32>
    %5 = arith.addf %2, %4 : vector<32x8xf32>
    %cst_5 = arith.constant 0.000000e+00 : f32
    %6 = vector.broadcast %cst_5 : f32 to vector<32x8xf32>
    %7 = arith.maximumf %5, %6 : vector<32x8xf32>
    %c0_6 = arith.constant 0 : index
    %c0_7 = arith.constant 0 : index
    %8 = vector.load %arg4[%c0_6, %c0_7] : memref<32x32xf32, #tpu.memory_space<vmem>>, vector<32x32xf32>
    %cst_8 = arith.constant dense<0.000000e+00> : vector<32x8xf32>
    %9 = tpu.matmul %8, %7, %cst_8 {dimension_numbers = #tpu.dot_dimension_numbers<[1], [0], [0], [1], [0, 0, 1, 1], [], []>} : vector<32x32xf32>, vector<32x8xf32>, vector<32x8xf32> -> vector<32x8xf32>
    %c0_9 = arith.constant 0 : index
    %c0_10 = arith.constant 0 : index
    %10 = vector.load %arg5[%c0_9, %c0_10] : memref<32x1xf32, #tpu.memory_space<vmem>>, vector<32x1xf32>
    %11 = vector.broadcast %10 : vector<32x1xf32> to vector<32x8xf32>
    %12 = arith.addf %9, %11 : vector<32x8xf32>
    %cst_11 = arith.constant 0.000000e+00 : f32
    %13 = vector.broadcast %cst_11 : f32 to vector<32x8xf32>
    %14 = arith.maximumf %12, %13 : vector<32x8xf32>
    %c0_12 = arith.constant 0 : index
    %c0_13 = arith.constant 0 : index
    %15 = vector.load %arg6[%c0_12, %c0_13] : memref<1x32xf32, #tpu.memory_space<vmem>>, vector<1x32xf32>
    %cst_14 = arith.constant dense<0.000000e+00> : vector<1x8xf32>
    %16 = tpu.matmul %15, %14, %cst_14 {dimension_numbers = #tpu.dot_dimension_numbers<[1], [0], [0], [1], [0, 0, 1, 1], [], []>} : vector<1x32xf32>, vector<32x8xf32>, vector<1x8xf32> -> vector<1x8xf32>
    %c0_15 = arith.constant 0 : index
    %c0_16 = arith.constant 0 : index
    %17 = memref.load %arg7[%c0_15, %c0_16] : memref<1x1xf32, #tpu.memory_space<smem>>
    %18 = vector.broadcast %17 : f32 to vector<1x8xf32>
    %19 = arith.addf %16, %18 : vector<1x8xf32>
    %c0_17 = arith.constant 0 : index
    %c0_18 = arith.constant 0 : index
    %20 = vector.load %arg8[%c0_17, %c0_18] : memref<1x8xf32, #tpu.memory_space<vmem>>, vector<1x8xf32>
    tpu.vector_store %arg8[%c0_17, %c0_18], %19 {strides = array<i32>} : memref<1x8xf32, #tpu.memory_space<vmem>>, vector<1x8xf32>,
    return
  }
  func.func @transform_0(%arg0: i32) -> (i32, i32) {
    %c0_i32 = arith.constant 0 : i32
    %c0_i32_0 = arith.constant 0 : i32
    return %c0_i32, %arg0 : i32, i32
  }
  func.func @transform_1(%arg0: i32) -> (i32, i32) {
    %c0_i32 = arith.constant 0 : i32
    %c0_i32_0 = arith.constant 0 : i32
    %c0_i32_1 = arith.constant 0 : i32
    return %c0_i32, %c0_i32_0 : i32, i32
  }
  func.func @transform_2(%arg0: i32) -> (i32, i32) {
    %c0_i32 = arith.constant 0 : i32
    %c0_i32_0 = arith.constant 0 : i32
    %c0_i32_1 = arith.constant 0 : i32
    return %c0_i32, %c0_i32_0 : i32, i32
  }
  func.func @transform_3(%arg0: i32) -> (i32, i32) {
    %c0_i32 = arith.constant 0 : i32
    %c0_i32_0 = arith.constant 0 : i32
    %c0_i32_1 = arith.constant 0 : i32
    return %c0_i32, %c0_i32_0 : i32, i32
  }
  func.func @transform_4(%arg0: i32) -> (i32, i32) {
    %c0_i32 = arith.constant 0 : i32
    %c0_i32_0 = arith.constant 0 : i32
    %c0_i32_1 = arith.constant 0 : i32
    return %c0_i32, %c0_i32_0 : i32, i32
  }
  func.func @transform_5(%arg0: i32) -> (i32, i32) {
    %c0_i32 = arith.constant 0 : i32
    %c0_i32_0 = arith.constant 0 : i32
    %c0_i32_1 = arith.constant 0 : i32
    return %c0_i32, %c0_i32_0 : i32, i32
  }
  func.func @transform_6(%arg0: i32) -> (i32, i32) {
    %c0_i32 = arith.constant 0 : i32
    %c0_i32_0 = arith.constant 0 : i32
    %c0_i32_1 = arith.constant 0 : i32
    return %c0_i32, %c0_i32_0 : i32, i32
  }
  func.func @transform_7(%arg0: i32) -> (i32, i32) {
    %c0_i32 = arith.constant 0 : i32
    %c0_i32_0 = arith.constant 0 : i32
    return %c0_i32, %arg0 : i32, i32
  }
}

</mosaic_0001>

<bundles_post_ra>
// kernel: tpu_custom_call.1
= control target key start
LH: loop header
LB: loop body
LE: loop exit
PB: predicated region body
PF: predicated region fallthrough
CT: control target
= control target key end

     0   :  { %vm60_vm0 = vcmask 261120   ;;  %v505_v6 = vmov 0   ;;  %s637_s0 = inlined_call_operand.vmem [shape: f32[32,8], index: 0, kind: input, shape index: {}]   ;;  %s638_s1 = inlined_call_operand.vmem [shape: f32[32,32], index: 1, kind: input, shape index: {}]   ;;  %s639_s2 = inlined_call_operand.vmem [shape: f32[32,1], index: 2, kind: input, shape index: {}]   ;;  %s640_s3 = inlined_call_operand.vmem [shape: f32[32,32], index: 3, kind: input, shape index: {}]   ;;  %s641_s4 = inlined_call_operand.vmem [shape: f32[32,1], index: 4, kind: input, shape index: {}]   ;;  %s642_s5 = inlined_call_operand.vmem [shape: f32[1,32], index: 5, kind: input, shape index: {}]   ;;  %s643_s6 = inlined_call_operand.<no memory space> [shape: f32[1,1], index: 6, kind: input, shape index: {}]   ;;  %s644_s7 = inlined_call_operand.hbm [shape: f32[1,8], index: 7, kind: output, shape index: {}]  }
   0x1   :  { %v28_v0 = vld [vmem:[%s637_s0] sm:$0xff]  ;;  %v29_v1 = vld [vmem:[%s637_s0 + $0x8] sm:$0xff]  ;;  %v30_v2 = vld [vmem:[%s637_s0 + $0x10] sm:$0xff]  ;;  %479 = vset.pattern.permute.xlu0 %v505_v6  ;;  %480 = vset.pattern.permute.xlu1 %v505_v6 }
   0x2   :  { %v452_v3 = vpack.c.bf16 %v29_v1, %v28_v0  ;;  %v31_v4 = vld [vmem:[%s637_s0 + $0x18] sm:$0xff]  ;;  %v32_v5 = vld [vmem:[%s638_s1] sm:$0xff]  ;;  %v38_v9 = vld [vmem:[%s639_s2 + $0x10] sm:$0xff] }
   0x3   :  { %v456_v7 = vpack.c.bf16 %v31_v4, %v30_v2  ;;  %421 = vmatprep.mubr.msk.f32.mxu0 %vm60_vm0, %v32_v5  ;;  %v36_v8 = vld [vmem:[%s639_s2] sm:$0xff]  ;;  %52 = vperm.xlu1 %480, %v38_v9   ;;  %v37_v10 = vld [vmem:[%s639_s2 + $0x8] sm:$0xff]  ;;  %v39_v11 = vld [vmem:[%s639_s2 + $0x18] sm:$0xff] }
   0x4   :  { %453 = vmatprep.subr.bf16.mxu0 %v452_v3  ;;  %42 = vperm.xlu0 %479, %v36_v8  }
   0x5   :  { %455 = vmatpush3.bf16.msra.mxu0 %v452_v3 }
   0x6   :  { %457 = vmatprep.subr.bf16.mxu0 %v456_v7 }
   0x7   :  { %13 = vsyncpa [#allocation4], 0  ;;  %v33_v12 = vld [vmem:[%s638_s1 + $0x8] sm:$0xff]  ;;  %57 = vperm.xlu1 %480, %v39_v11   ;;  %v166_v13 = vld [vmem:[%s641_s4] sm:$0xff]  ;;  %v506_v41 = vmov 0.0|0.0   ;;  %vm507_vm1 = vmmov 0   ;;  %v293_v62 = vstv %s643_s6 }
   0x8   :  { %47 = vperm.xlu0 %479, %v37_v10   ;;  %v34_v14 = vld [vmem:[%s638_s1 + $0x10] sm:$0xff]  ;;  %v167_v15 = vld [vmem:[%s641_s4 + $0x8] sm:$0xff]  ;;  %v35_v16 = vld [vmem:[%s638_s1 + $0x18] sm:$0xff]  ;;  %v508_v42 = vmov 0.0   ;;  %s509_s16 = smov [#allocation3]   ;;  %vm367_vm2 = vcmask 57344  }
   0x9   :  { %459 = vmatpush3.bf16.msra.mxu0 %v456_v7  ;;  %v168_v17 = vld [vmem:[%s641_s4 + $0x10] sm:$0xff]  ;;  %v169_v18 = vld [vmem:[%s641_s4 + $0x18] sm:$0xff]  ;;  %v162_v19 = vld [vmem:[%s640_s3] sm:$0xff]  ;;  %s375_s17 = sshll.u32 %s509_s16, 4  ;;  %s376_s17 = int_to_ptr.vmem [resolvable:$true] %s375_s17 }
   0xa   :  { %435 = vmatprep.mubr.msk.f32.mxu1 %vm60_vm0, %v162_v19  ;;  %v163_v38 = vld [vmem:[%s640_s3 + $0x8] sm:$0xff]  ;;  %v164_v39 = vld [vmem:[%s640_s3 + $0x10] sm:$0xff]  ;;  %v165_v40 = vld [vmem:[%s640_s3 + $0x18] sm:$0xff]  ;;  %468 = vmatprep.subr.bf16.mxu0 %v506_v41  ;;  %s481_s18 = scalar_lea.vmem %s376_s17, 16  ;;  %s485_s19 = scalar_lea.vmem %s376_s17, 32 }
   0xb   :  { %177 = vperm.xlu1 %480, %v167_v15   ;;  %v291_v61 = vld [vmem:[%s642_s5] sm:$0x1]  ;;  %p482_p0 = scmp.ne.s32.totalorder %s376_s17, %s481_s18  ;;  %p486_p1 = scmp.lt.s32.totalorder %s376_s17, %s376_s17 }
   0xc   :  { %422 = vmatmul.mubr.msk.f32.vlgmr.msra.gmra.mrb[0].mxu0 %vm60_vm0, %v33_v12  ;;  %172 = vperm.xlu0 %479, %v166_v13   ;;  %p487_p2 = scmp.lt.s32.totalorder %s485_s19, %s481_s18 }
   0xd   :  { %424 = vmatprep.mubr.msk.f32.mxu0 %vm60_vm0, %v34_v14 }
   0xe   :  { %p488_p3 = por %p487_p2, %p486_p1 }
   0xf   :  { %187 = vperm.xlu1 %480, %v169_v18  }
  0x10   :  { %425 = vmatmul.mubr.msk.f32.gmra.mrb[2].mxu0 %vm60_vm0, %v35_v16  ;;  %182 = vperm.xlu0 %479, %v168_v17   ;;  %p489_p4 = pnand %p488_p3, %p482_p0 }
  0x11   :  { %449 = vmatprep.mubr.msk.f32.mxu0 %vm507_vm1, %v508_v42 }
  0x82   :  { %v53_v21 = vpop.permute.xlu1 %52 }
  0x83   :  { %v43_v20 = vpop.permute.xlu0 %42 }
  0x86   :  { %v58_v28 = vpop.permute.xlu1 %57 }
  0x87   :  { %v48_v22 = vpop.permute.xlu0 %47 }
  0x8a   :  { %v178_v43 = vpop.permute.xlu1 %177 }
  0x8b   :  { %v173_v44 = vpop.permute.xlu0 %172 }
  0x8e   :  { %v188_v50 = vpop.permute.xlu1 %187 }
  0x8f   :  { %v183_v53 = vpop.permute.xlu0 %182 }
  0xdf   :  { %v423_v23 = vpop.f32.mrb[0].mxu0 }
  0xe0   :  { %v145_v24 = vadd.f32 %v423_v23, %v48_v22  ;;  %v139_v25 = vpop.f32.mrb[1].mxu0 }
  0xe1   :  { %v140_v26 = vadd.f32 %v139_v25, %v43_v20 }
  0xe2   :  { %v159_v27 = vmax.f32 %v145_v24, 0.0 }
  0xe3   :  { %v158_v29 = vmax.f32 %v140_v26, 0.0  ;;  %v426_v30 = vpop.f32.mrb[2].mxu0 }
  0xe4   :  { %v155_v31 = vadd.f32 %v426_v30, %v58_v28  ;;  %v149_v32 = vpop.f32.mrb[3].mxu0 }
  0xe5   :  { %v150_v33 = vadd.f32 %v149_v32, %v53_v21  ;;  %v460_v34 = vpack.c.bf16 %v159_v27, %v158_v29 }
  0xe6   :  { %v161_v35 = vmax.f32 %v155_v31, 0.0 }
  0xe7   :  { %v160_v36 = vmax.f32 %v150_v33, 0.0  ;;  %461 = vmatprep.subr.bf16.mxu1 %v460_v34 }
  0xe8   :  { %463 = vmatpush3.bf16.msra.mxu1 %v460_v34 }
  0xe9   :  { %v464_v37 = vpack.c.bf16 %v161_v35, %v160_v36 }
  0xeb   :  { %465 = vmatprep.subr.bf16.mxu1 %v464_v37 }
  0xec   :  { %467 = vmatpush3.bf16.msra.mxu1 %v464_v37 }
  0xef   :  { %436 = vmatmul.mubr.msk.f32.vlgmr.msra.gmra.mrb[0].mxu1 %vm60_vm0, %v163_v38 }
  0xf0   :  { %438 = vmatprep.mubr.msk.f32.mxu1 %vm60_vm0, %v164_v39 }
  0xf3   :  { %439 = vmatmul.mubr.msk.f32.gmra.mrb[2].mxu1 %vm60_vm0, %v165_v40 }
 0x1c2   :  { %v437_v45 = vpop.f32.mrb[0].mxu1 }
 0x1c3   :  { %v274_v46 = vadd.f32 %v437_v45, %v178_v43  ;;  %v268_v47 = vpop.f32.mrb[1].mxu1 }
 0x1c4   :  { %v269_v48 = vadd.f32 %v268_v47, %v173_v44 }
 0x1c5   :  { %v288_v49 = vmax.f32 %v274_v46, 0.0 }
 0x1c6   :  { %v287_v51 = vmax.f32 %v269_v48, 0.0  ;;  %v440_v52 = vpop.f32.mrb[2].mxu1 }
 0x1c7   :  { %v284_v54 = vadd.f32 %v440_v52, %v188_v50  ;;  %v278_v55 = vpop.f32.mrb[3].mxu1 }
 0x1c8   :  { %v469_v56 = vpack.c.bf16 %v288_v49, %v287_v51  ;;  %v279_v57 = vadd.f32 %v278_v55, %v183_v53 }
 0x1c9   :  { %v290_v58 = vmax.f32 %v284_v54, 0.0 }
 0x1ca   :  { %v289_v59 = vmax.f32 %v279_v57, 0.0  ;;  %470 = vmatpush3.bf16.msra.mxu0 %v469_v56 }
 0x1cb   :  { %471 = vmatprep.subr.bf16.mxu0 %v506_v41 }
 0x1cc   :  { %v472_v60 = vpack.c.bf16 %v290_v58, %v289_v59 }
 0x1ce   :  { %473 = vmatpush3.bf16.msra.mxu0 %v472_v60 }
 0x1d1   :  { %450 = vmatmul.mubr.msk.f32.vlgmr.msra.gmra.mrb[4].mxu0 %vm60_vm0, %v291_v61 }
 0x2a4   :  { %v363_v63 = vpop.f32.mrb[4].mxu0 }
 0x2a5   :  { %v364_v0 = vadd.f32 %v363_v63, %v293_v62  ;;  %v451_v1 = vpop.f32.mrb[5].mxu0 }
 0x2a7   :  { %368 = vst.msk [vmem:[#allocation3] sm:$0x1] %vm367_vm2, %v364_v0 }
 0x2a8   :  { %492 = shalt.err (!%p489_p4)
}
 0x2a9   :  { %s493_s6 = scalar_lea.hbm %s644_s7, 16 }
 0x2aa   :  { %p494_p5 = scmp.ne.s32.totalorder %s644_s7, %s493_s6  ;;  %p497_p6 = scmp.lt.u32.totalorder %s493_s6, %s644_s7 }
 0x2ac   :  { %p499_p7 = pnand %p497_p6, %p494_p5 }
 0x2ae   :  { %502 = shalt.err (!%p499_p7)
}
 0x2af   :  { %378 = dma.vmem_to_hbm [thread:$0]  %s376_s17, 16, %s644_s7, [#allocation4]  }
 0x2b0   :  { %503 = dma.done.wait [#allocation4], 16  }
 0x2b1   :  { %504 = vsyncadd [#allocation4], 4294967280 }
 0x2b2   :  { %382 = vsyncpa [#allocation4], 1 }

</bundles_post_ra>
